<compile_context>
chip_gen: v5e
topology: v5e:2x2
jax: 0.10.0
libtpu: 0.0.40
codegen_flags: <defaults>
</compile_context>

<pallas_src>
import functools

import jax
import jax.numpy as jnp
from jax.experimental import pallas as pl
from jax.experimental.pallas import tpu as pltpu

IN_DIM = 1280
LN_EPS = 1e-5


def _round_up(v, m):
    return (v + m - 1) // m * m


def _layernorm_f32(h, gamma, beta):
    """Single-pass LayerNorm over the last dim. h f32 (bm, H); gamma/beta (1, H)."""
    inv_n = 1.0 / h.shape[-1]
    s = jnp.sum(h, axis=-1, keepdims=True)
    ss = jnp.sum(h * h, axis=-1, keepdims=True)
    mu = s * inv_n
    # E[h^2] - E[h]^2 can go slightly negative from cancellation -> clamp before rsqrt.
    var = jnp.maximum(ss * inv_n - mu * mu, 0.0)
    scale = jax.lax.rsqrt(var + LN_EPS) * gamma          # fold gamma into the multiplier
    return h * scale + (beta - mu * scale)


def _layernormnet_kernel(x_ref, w1_ref, ln_ref, w2_ref, w3_ref, b3_ref, o_ref):
    # x arrives f32 straight from HBM; cast to bf16 in-kernel (VPU work hidden
    # under the DMA), MXU accumulates in f32.
    x = x_ref[...].astype(jnp.bfloat16)
    ln = ln_ref[...]                 # (6, hidden) f32: b1, g1, bb1, b2, g2, bb2

    # fc1 -> ln1 -> dropout(eval: identity) -> relu
    h = jnp.dot(x, w1_ref[...], preferred_element_type=jnp.float32) + ln[0:1, :]
    h = _layernorm_f32(h, ln[1:2, :], ln[2:3, :])
    h = jnp.maximum(h, 0.0)

    # fc2 -> ln2 -> dropout(eval: identity) -> relu
    h = jnp.dot(h.astype(jnp.bfloat16), w2_ref[...],
                preferred_element_type=jnp.float32) + ln[3:4, :]
    h = _layernorm_f32(h, ln[4:5, :], ln[5:6, :])
    h = jnp.maximum(h, 0.0)

    # fc3 (bias already lives in the padded, lane-dense output space)
    out = jnp.dot(h.astype(jnp.bfloat16), w3_ref[...],
                  preferred_element_type=jnp.float32) + b3_ref[...]
    o_ref[...] = out.astype(o_ref.dtype)
    # TODO(synk): training-mode dropout (pltpu.stateful_bernoulli) not implemented.
    # TODO(synk): if hidden grows to >=1024 and the kernel leaves the HBM-bound
    # regime, K-tile w1/w2 over an extra "arbitrary" grid axis with a VMEM f32
    # accumulator and compute the LN row-sums on the MXU (h @ ones) instead of
    # two cross-lane jnp.sum reductions per LayerNorm.


def prepare_params(params):
    """One-time packing of the module parameters for the kernel.

    Casts matmul weights to bf16, lane-pads w3/b3 to a multiple of 128 and
    stacks both LayerNorms' (bias, gamma, beta) into one (6, hidden) f32 block.
    Call ONCE outside the jitted forward so no per-call HBM weight pass.
    """
    out_dim = params["w3"].shape[1]
    out_pad = _round_up(out_dim, 128)
    w3 = params["w3"].astype(jnp.bfloat16)
    b3 = params["b3"].astype(jnp.float32)
    if out_pad != out_dim:
        w3 = jnp.pad(w3, ((0, 0), (0, out_pad - out_dim)))
        b3 = jnp.pad(b3, ((0, 0), (0, out_pad - out_dim)))
    ln = jnp.concatenate(
        [params["b1"], params["g1"], params["bb1"],
         params["b2"], params["g2"], params["bb2"]], axis=0).astype(jnp.float32)
    return {
        "w1": params["w1"].astype(jnp.bfloat16),
        "w2": params["w2"].astype(jnp.bfloat16),
        "w3": w3,
        "b3": b3,
        "ln": ln,
    }


@functools.partial(
    jax.jit,
    static_argnames=("out_dim", "block_m", "out_dtype", "single_buffer_weights",
                     "vmem_limit_bytes", "return_padded"))
def layernormnet_forward(x, packed, *, out_dim, block_m=1024,
                         out_dtype=jnp.float32, single_buffer_weights=False,
                         vmem_limit_bytes=None, return_padded=False):
    """Eval-mode forward. x: (N, 1280) f32, packed = prepare_params(params).

    Returns (N, out_dim) in out_dtype (or the padded (N, out_pad) buffer if
    return_padded=True). block_m guidance: 256-512 v5e, 512-1024 v6e,
    1024-2048 v7x.
    """
    n, in_dim = x.shape
    assert in_dim == IN_DIM
    hidden = packed["w1"].shape[1]
    out_pad = packed["w3"].shape[1]

    # Batch tile: sublane-aligned, clamped so the grid keeps >= 2 steps when the
    # batch allows it (v7x megacore + pipeline overlap).  No zero-padding of x:
    # the ragged last tile uses Pallas partial-block masking (rows are
    # independent, so the garbage rows are never written back).
    bm = max(8, _round_up(int(block_m), 8))
    n8 = _round_up(n, 8)
    if n8 > 8:
        bm = min(bm, _round_up(n8 // 2, 8))
    bm = min(bm, n8)
    grid_m = pl.cdiv(n, bm)

    out_bytes = jnp.dtype(out_dtype).itemsize

    # Explicit VMEM budget: live buffers + 25% headroom, clamped to
    # [32 MiB, 48 MiB] (48 MiB keeps headroom vs v7x's 64 MiB physical VMEM).
    if vmem_limit_bytes is None:
        w_bytes = (IN_DIM * hidden + hidden * hidden + hidden * out_pad) * 2
        p_bytes = (8 * hidden + 8 * out_pad) * 4          # sublane-padded params
        wbuf = 1 if single_buffer_weights else 2
        live = (2 * bm * IN_DIM * 4 + 2 * bm * out_pad * out_bytes
                + wbuf * (w_bytes + p_bytes))
        scratch = 3 * bm * hidden * 4 + bm * max(hidden, out_pad) * 4
        vmem_limit = int(1.25 * (live + scratch))
        vmem_limit = min(max(vmem_limit, 32 << 20), 48 << 20)
    else:
        vmem_limit = int(vmem_limit_bytes)

    full = lambda i: (0, 0)   # grid-invariant parameter blocks

    def wspec(shape):
        # Single-buffering halves the resident weights' VMEM footprint; only
        # worth enabling for large hidden on v7x, so it is off by default.
        if single_buffer_weights:
            return pl.BlockSpec(shape, full, pipeline_mode=pl.Buffered(1))
        return pl.BlockSpec(shape, full)

    grid_spec = pltpu.PrefetchScalarGridSpec(
        num_scalar_prefetch=0,
        grid=(grid_m,),
        in_specs=[
            pl.BlockSpec((bm, IN_DIM), lambda i: (i, 0)),   # x tile (f32)
            wspec((IN_DIM, hidden)),                        # w1 (bf16)
            wspec((6, hidden)),                             # ln1+ln2 bias/gamma/beta
            wspec((hidden, hidden)),                        # w2 (bf16)
            wspec((hidden, out_pad)),                       # w3 (bf16, lane-padded)
            wspec((1, out_pad)),                            # b3 (f32, lane-padded)
        ],
        out_specs=pl.BlockSpec((bm, out_pad), lambda i: (i, 0)),
    )

    # Advisory cost estimate for XLA's scheduler.
    flops = 2 * n * (IN_DIM * hidden + hidden * hidden + hidden * out_pad)
    bytes_accessed = (
        n * IN_DIM * 4                                                 # x (f32)
        + n * out_pad * out_bytes                                      # output
        + (IN_DIM * hidden + hidden * hidden + hidden * out_pad) * 2  # weights
        + (6 * hidden + out_pad) * 4)                                  # ln params + b3
    cost = pl.CostEstimate(flops=int(flops), transcendentals=2 * n,
                           bytes_accessed=int(bytes_accessed))

    out = pl.pallas_call(
        _layernormnet_kernel,
        out_shape=jax.ShapeDtypeStruct((n, out_pad), out_dtype),
        grid_spec=grid_spec,
        compiler_params=pltpu.CompilerParams(
            dimension_semantics=("parallel",),
            vmem_limit_bytes=vmem_limit),
        cost_estimate=cost,
    )(x, packed["w1"], packed["ln"], packed["w2"], packed["w3"], packed["b3"])

    if return_padded or out_pad == out_dim:
        return out
    return out[:, :out_dim]


def init_params(key, hidden_dim, out_dim, dtype=jnp.float32):
    """Deterministic synthetic parameters (same shapes as the PyTorch module)."""
    ks = jax.random.split(key, 6)
    scale1 = 1.0 / jnp.sqrt(IN_DIM)
    scale2 = 1.0 / jnp.sqrt(hidden_dim)
    return {
        # Linear weights stored transposed relative to PyTorch: (in, out).
        "w1": jax.random.uniform(ks[0], (IN_DIM, hidden_dim), dtype, -scale1, scale1),
        "b1": jax.random.uniform(ks[1], (1, hidden_dim), dtype, -scale1, scale1),
        "g1": jnp.ones((1, hidden_dim), dtype),    # LayerNorm weight
        "bb1": jnp.zeros((1, hidden_dim), dtype),  # LayerNorm bias
        "w2": jax.random.uniform(ks[2], (hidden_dim, hidden_dim), dtype, -scale2, scale2),
        "b2": jax.random.uniform(ks[3], (1, hidden_dim), dtype, -scale2, scale2),
        "g2": jnp.ones((1, hidden_dim), dtype),
        "bb2": jnp.zeros((1, hidden_dim), dtype),
        "w3": jax.random.uniform(ks[4], (hidden_dim, out_dim), dtype, -scale2, scale2),
        "b3": jax.random.uniform(ks[5], (1, out_dim), dtype, -scale2, scale2),
    }


def reference_forward(x, params):
    """Pure-JAX f32 reference of the eval-mode forward pass."""
    def ln(h, g, b):
        mu = jnp.mean(h, axis=-1, keepdims=True)
        var = jnp.mean(jnp.square(h - mu), axis=-1, keepdims=True)
        return (h - mu) * jax.lax.rsqrt(var + LN_EPS) * g + b

    h = x @ params["w1"] + params["b1"]
    h = jnp.maximum(ln(h, params["g1"], params["bb1"]), 0.0)
    h = h @ params["w2"] + params["b2"]
    h = jnp.maximum(ln(h, params["g2"], params["bb2"]), 0.0)
    return h @ params["w3"] + params["b3"]


if __name__ == "__main__":
    hidden_dim = 128
    out_dim = 64
    batch = 16

    key = jax.random.PRNGKey(0)
    kx, kp = jax.random.split(key)
    x = jax.random.normal(kx, (batch, IN_DIM), jnp.float32)
    params = init_params(kp, hidden_dim, out_dim)

    packed = prepare_params(params)          # one-time bf16 cast / pad / concat
    out = layernormnet_forward(x, packed, out_dim=out_dim)
    out = jax.block_until_ready(out)

    ref = reference_forward(x, params)
    assert out.shape == (batch, out_dim)
    # bf16 matmul operands (f32 accumulation) vs. f32 reference -> loose tolerance.
    assert jnp.allclose(out, ref, atol=3e-2, rtol=3e-2), "mismatch vs reference"

    print("KERNEL_OK")
</pallas_src>

<mosaic_0001>
module attributes {stable_mosaic.version = 11 : i64} {
  func.func @_layernormnet_kernel(%arg0: i32, %arg1: memref<8x1280xf32, #tpu.memory_space<vmem>>, %arg2: memref<1280x128xbf16, #tpu.memory_space<vmem>>, %arg3: memref<6x128xf32, #tpu.memory_space<vmem>>, %arg4: memref<128x128xbf16, #tpu.memory_space<vmem>>, %arg5: memref<128x128xbf16, #tpu.memory_space<vmem>>, %arg6: memref<1x128xf32, #tpu.memory_space<vmem>>, %arg7: memref<8x128xf32, #tpu.memory_space<vmem>>) attributes {dimension_semantics = [#tpu.dimension_semantics<parallel>], iteration_bounds = array<i64: 2>, scalar_prefetch = 0 : i64, scratch_operands = 0 : i64, tpu.core_type = #tpu.core_type<tc>, window_params = [{transform_indices = @transform_0, window_bounds = array<i64: 8, 1280>}, {pipeline_mode = #tpu.pipeline_mode<synchronous>, transform_indices = @transform_1, window_bounds = array<i64: 1280, 128>}, {pipeline_mode = #tpu.pipeline_mode<synchronous>, transform_indices = @transform_2, window_bounds = array<i64: 6, 128>}, {pipeline_mode = #tpu.pipeline_mode<synchronous>, transform_indices = @transform_3, window_bounds = array<i64: 128, 128>}, {pipeline_mode = #tpu.pipeline_mode<synchronous>, transform_indices = @transform_4, window_bounds = array<i64: 128, 128>}, {pipeline_mode = #tpu.pipeline_mode<synchronous>, transform_indices = @transform_5, window_bounds = array<i64: 1, 128>}, {transform_indices = @transform_6, window_bounds = array<i64: 8, 128>}]} {
    %c0 = arith.constant 0 : index
    %c0_0 = arith.constant 0 : index
    %0 = vector.load %arg1[%c0, %c0_0] : memref<8x1280xf32, #tpu.memory_space<vmem>>, vector<8x1280xf32>
    %1 = arith.truncf %0 : vector<8x1280xf32> to vector<8x1280xbf16>
    %c0_1 = arith.constant 0 : index
    %c0_2 = arith.constant 0 : index
    %2 = vector.load %arg3[%c0_1, %c0_2] : memref<6x128xf32, #tpu.memory_space<vmem>>, vector<6x128xf32>
    %c0_3 = arith.constant 0 : index
    %c0_4 = arith.constant 0 : index
    %3 = vector.load %arg2[%c0_3, %c0_4] : memref<1280x128xbf16, #tpu.memory_space<vmem>>, vector<1280x128xbf16>
    %cst = arith.constant dense<0.000000e+00> : vector<8x128xf32>
    %4 = tpu.matmul %1, %3, %cst {dimension_numbers = #tpu.dot_dimension_numbers<[1], [0], [0], [1], [0, 0, 1, 1], [], []>} : vector<8x1280xbf16>, vector<1280x128xbf16>, vector<8x128xf32> -> vector<8x128xf32>
    %5 = vector.extract_strided_slice %2 {offsets = [0, 0], sizes = [1, 128], strides = [1, 1]} : vector<6x128xf32> to vector<1x128xf32>
    %6 = vector.broadcast %5 : vector<1x128xf32> to vector<8x128xf32>
    %7 = arith.addf %4, %6 : vector<8x128xf32>
    %8 = vector.extract_strided_slice %2 {offsets = [1, 0], sizes = [1, 128], strides = [1, 1]} : vector<6x128xf32> to vector<1x128xf32>
    %9 = vector.extract_strided_slice %2 {offsets = [2, 0], sizes = [1, 128], strides = [1, 1]} : vector<6x128xf32> to vector<1x128xf32>
    %cst_5 = arith.constant dense<0.000000e+00> : vector<8xf32>
    %10 = vector.multi_reduction <add>, %7, %cst_5 [1] : vector<8x128xf32> to vector<8xf32>
    %11 = vector.shape_cast %10 : vector<8xf32> to vector<8x1xf32>
    %12 = arith.mulf %7, %7 : vector<8x128xf32>
    %cst_6 = arith.constant dense<0.000000e+00> : vector<8xf32>
    %13 = vector.multi_reduction <add>, %12, %cst_6 [1] : vector<8x128xf32> to vector<8xf32>
    %14 = vector.shape_cast %13 : vector<8xf32> to vector<8x1xf32>
    %cst_7 = arith.constant 7.812500e-03 : f32
    %15 = vector.broadcast %cst_7 : f32 to vector<8x1xf32>
    %16 = arith.mulf %11, %15 : vector<8x1xf32>
    %cst_8 = arith.constant 7.812500e-03 : f32
    %17 = vector.broadcast %cst_8 : f32 to vector<8x1xf32>
    %18 = arith.mulf %14, %17 : vector<8x1xf32>
    %19 = arith.mulf %16, %16 : vector<8x1xf32>
    %20 = arith.subf %18, %19 : vector<8x1xf32>
    %cst_9 = arith.constant 0.000000e+00 : f32
    %21 = vector.broadcast %cst_9 : f32 to vector<8x1xf32>
    %22 = arith.maximumf %20, %21 : vector<8x1xf32>
    %cst_10 = arith.constant 9.99999974E-6 : f32
    %23 = vector.broadcast %cst_10 : f32 to vector<8x1xf32>
    %24 = arith.addf %22, %23 : vector<8x1xf32>
    %25 = math.rsqrt %24 : vector<8x1xf32>
    %26 = vector.broadcast %25 : vector<8x1xf32> to vector<8x128xf32>
    %27 = vector.broadcast %8 : vector<1x128xf32> to vector<8x128xf32>
    %28 = arith.mulf %26, %27 : vector<8x128xf32>
    %29 = arith.mulf %7, %28 : vector<8x128xf32>
    %30 = vector.broadcast %16 : vector<8x1xf32> to vector<8x128xf32>
    %31 = arith.mulf %30, %28 : vector<8x128xf32>
    %32 = vector.broadcast %9 : vector<1x128xf32> to vector<8x128xf32>
    %33 = arith.subf %32, %31 : vector<8x128xf32>
    %34 = arith.addf %29, %33 : vector<8x128xf32>
    %cst_11 = arith.constant 0.000000e+00 : f32
    %35 = vector.broadcast %cst_11 : f32 to vector<8x128xf32>
    %36 = arith.maximumf %34, %35 : vector<8x128xf32>
    %37 = arith.truncf %36 : vector<8x128xf32> to vector<8x128xbf16>
    %c0_12 = arith.constant 0 : index
    %c0_13 = arith.constant 0 : index
    %38 = vector.load %arg4[%c0_12, %c0_13] : memref<128x128xbf16, #tpu.memory_space<vmem>>, vector<128x128xbf16>
    %cst_14 = arith.constant dense<0.000000e+00> : vector<8x128xf32>
    %39 = tpu.matmul %37, %38, %cst_14 {dimension_numbers = #tpu.dot_dimension_numbers<[1], [0], [0], [1], [0, 0, 1, 1], [], []>} : vector<8x128xbf16>, vector<128x128xbf16>, vector<8x128xf32> -> vector<8x128xf32>
    %40 = vector.extract_strided_slice %2 {offsets = [3, 0], sizes = [1, 128], strides = [1, 1]} : vector<6x128xf32> to vector<1x128xf32>
    %41 = vector.broadcast %40 : vector<1x128xf32> to vector<8x128xf32>
    %42 = arith.addf %39, %41 : vector<8x128xf32>
    %43 = vector.extract_strided_slice %2 {offsets = [4, 0], sizes = [1, 128], strides = [1, 1]} : vector<6x128xf32> to vector<1x128xf32>
    %44 = vector.extract_strided_slice %2 {offsets = [5, 0], sizes = [1, 128], strides = [1, 1]} : vector<6x128xf32> to vector<1x128xf32>
    %cst_15 = arith.constant dense<0.000000e+00> : vector<8xf32>
    %45 = vector.multi_reduction <add>, %42, %cst_15 [1] : vector<8x128xf32> to vector<8xf32>
    %46 = vector.shape_cast %45 : vector<8xf32> to vector<8x1xf32>
    %47 = arith.mulf %42, %42 : vector<8x128xf32>
    %cst_16 = arith.constant dense<0.000000e+00> : vector<8xf32>
    %48 = vector.multi_reduction <add>, %47, %cst_16 [1] : vector<8x128xf32> to vector<8xf32>
    %49 = vector.shape_cast %48 : vector<8xf32> to vector<8x1xf32>
    %cst_17 = arith.constant 7.812500e-03 : f32
    %50 = vector.broadcast %cst_17 : f32 to vector<8x1xf32>
    %51 = arith.mulf %46, %50 : vector<8x1xf32>
    %cst_18 = arith.constant 7.812500e-03 : f32
    %52 = vector.broadcast %cst_18 : f32 to vector<8x1xf32>
    %53 = arith.mulf %49, %52 : vector<8x1xf32>
    %54 = arith.mulf %51, %51 : vector<8x1xf32>
    %55 = arith.subf %53, %54 : vector<8x1xf32>
    %cst_19 = arith.constant 0.000000e+00 : f32
    %56 = vector.broadcast %cst_19 : f32 to vector<8x1xf32>
    %57 = arith.maximumf %55, %56 : vector<8x1xf32>
    %cst_20 = arith.constant 9.99999974E-6 : f32
    %58 = vector.broadcast %cst_20 : f32 to vector<8x1xf32>
    %59 = arith.addf %57, %58 : vector<8x1xf32>
    %60 = math.rsqrt %59 : vector<8x1xf32>
    %61 = vector.broadcast %60 : vector<8x1xf32> to vector<8x128xf32>
    %62 = vector.broadcast %43 : vector<1x128xf32> to vector<8x128xf32>
    %63 = arith.mulf %61, %62 : vector<8x128xf32>
    %64 = arith.mulf %42, %63 : vector<8x128xf32>
    %65 = vector.broadcast %51 : vector<8x1xf32> to vector<8x128xf32>
    %66 = arith.mulf %65, %63 : vector<8x128xf32>
    %67 = vector.broadcast %44 : vector<1x128xf32> to vector<8x128xf32>
    %68 = arith.subf %67, %66 : vector<8x128xf32>
    %69 = arith.addf %64, %68 : vector<8x128xf32>
    %cst_21 = arith.constant 0.000000e+00 : f32
    %70 = vector.broadcast %cst_21 : f32 to vector<8x128xf32>
    %71 = arith.maximumf %69, %70 : vector<8x128xf32>
    %72 = arith.truncf %71 : vector<8x128xf32> to vector<8x128xbf16>
    %c0_22 = arith.constant 0 : index
    %c0_23 = arith.constant 0 : index
    %73 = vector.load %arg5[%c0_22, %c0_23] : memref<128x128xbf16, #tpu.memory_space<vmem>>, vector<128x128xbf16>
    %cst_24 = arith.constant dense<0.000000e+00> : vector<8x128xf32>
    %74 = tpu.matmul %72, %73, %cst_24 {dimension_numbers = #tpu.dot_dimension_numbers<[1], [0], [0], [1], [0, 0, 1, 1], [], []>} : vector<8x128xbf16>, vector<128x128xbf16>, vector<8x128xf32> -> vector<8x128xf32>
    %c0_25 = arith.constant 0 : index
    %c0_26 = arith.constant 0 : index
    %75 = vector.load %arg6[%c0_25, %c0_26] : memref<1x128xf32, #tpu.memory_space<vmem>>, vector<1x128xf32>
    %76 = vector.broadcast %75 : vector<1x128xf32> to vector<8x128xf32>
    %77 = arith.addf %74, %76 : vector<8x128xf32>
    %c0_27 = arith.constant 0 : index
    %c0_28 = arith.constant 0 : index
    %78 = vector.load %arg7[%c0_27, %c0_28] : memref<8x128xf32, #tpu.memory_space<vmem>>, vector<8x128xf32>
    tpu.vector_store %arg7[%c0_27, %c0_28], %77 {strides = array<i32>} : memref<8x128xf32, #tpu.memory_space<vmem>>, vector<8x128xf32>,
    return
  }
  func.func @transform_0(%arg0: i32) -> (i32, i32) {
    %c0_i32 = arith.constant 0 : i32
    %c0_i32_0 = arith.constant 0 : i32
    return %arg0, %c0_i32 : i32, i32
  }
  func.func @transform_1(%arg0: i32) -> (i32, i32) {
    %c0_i32 = arith.constant 0 : i32
    %c0_i32_0 = arith.constant 0 : i32
    %c0_i32_1 = arith.constant 0 : i32
    return %c0_i32, %c0_i32_0 : i32, i32
  }
  func.func @transform_2(%arg0: i32) -> (i32, i32) {
    %c0_i32 = arith.constant 0 : i32
    %c0_i32_0 = arith.constant 0 : i32
    %c0_i32_1 = arith.constant 0 : i32
    return %c0_i32, %c0_i32_0 : i32, i32
  }
  func.func @transform_3(%arg0: i32) -> (i32, i32) {
    %c0_i32 = arith.constant 0 : i32
    %c0_i32_0 = arith.constant 0 : i32
    %c0_i32_1 = arith.constant 0 : i32
    return %c0_i32, %c0_i32_0 : i32, i32
  }
  func.func @transform_4(%arg0: i32) -> (i32, i32) {
    %c0_i32 = arith.constant 0 : i32
    %c0_i32_0 = arith.constant 0 : i32
    %c0_i32_1 = arith.constant 0 : i32
    return %c0_i32, %c0_i32_0 : i32, i32
  }
  func.func @transform_5(%arg0: i32) -> (i32, i32) {
    %c0_i32 = arith.constant 0 : i32
    %c0_i32_0 = arith.constant 0 : i32
    %c0_i32_1 = arith.constant 0 : i32
    return %c0_i32, %c0_i32_0 : i32, i32
  }
  func.func @transform_6(%arg0: i32) -> (i32, i32) {
    %c0_i32 = arith.constant 0 : i32
    %c0_i32_0 = arith.constant 0 : i32
    return %arg0, %c0_i32 : i32, i32
  }
}

</mosaic_0001>

<bundles_post_ra>
// kernel: layernormnet_forward.1
= control target key start
LH: loop header
LB: loop body
LE: loop exit
PB: predicated region body
PF: predicated region fallthrough
CT: control target
= control target key end

     0   :  { %s2595_s0 = inlined_call_operand.hbm [shape: f32[16,1280], index: 0, kind: input, shape index: {}]   ;;  %s2596_s1 = inlined_call_operand.hbm [shape: bf16[1280,128], index: 1, kind: input, shape index: {}]   ;;  %s2597_s2 = inlined_call_operand.hbm [shape: f32[6,128], index: 2, kind: input, shape index: {}]   ;;  %s2598_s3 = inlined_call_operand.hbm [shape: bf16[128,128], index: 3, kind: input, shape index: {}]   ;;  %s2599_s4 = inlined_call_operand.hbm [shape: bf16[128,128], index: 4, kind: input, shape index: {}]   ;;  %s2600_s5 = inlined_call_operand.hbm [shape: f32[1,128], index: 5, kind: input, shape index: {}]   ;;  %s2601_s6 = inlined_call_operand.hbm [shape: f32[16,128], index: 6, kind: output, shape index: {}]  }
   0x1   :  { %2602 = sst [smem:[#allocation19_spill]] %s2596_s1 }
   0x2   :  { %2603 = sst [smem:[#allocation20_spill]] %s2597_s2 }
   0x3   :  { %2604 = sst [smem:[#allocation21_spill]] %s2598_s3 }
   0x4   :  { %11 = vsyncpa [#allocation3], 0 }
   0x5   :  { %13 = vsyncpa [#allocation3 + $0x1], 0 }
   0x6   :  { %14 = vsyncpa [#allocation6], 0 }
   0x7   :  { %15 = vsyncpa [#allocation9], 0 }
   0x8   :  { %16 = vsyncpa [#allocation12], 0 }
   0x9   :  { %17 = vsyncpa [#allocation4], 0 }
   0xa   :  { %19 = vsyncpa [#allocation4 + $0x1], 0  ;;  %s2404_s21 = smov 0   ;;  %s2406_s22 = smov 0  }
   0xb   :  { %s2408_s23 = smov 0   ;;  %s2410_s24 = smov 0  }
   0xc LB: > { %s2605_s1 = sld [smem:[#allocation19_spill]]  ;;  %s2428_s28 = sadd.s32 4294967295, %s2360_s24   ;;  %s2360_s24 = sphi %s2410_s24, %s2618_s24   ;;  %s2356_s23 = sphi %s2408_s23, %s2617_s23   ;;  %s2352_s22 = sphi %s2406_s22, %s2616_s22   ;;  %s2348_s21 = sphi %s2404_s21, %s2615_s21  }
   0xd   : > { %p1496_p0 = scmp.ge.s32.totalorder %s2360_s24, 1  ;;  %p46_p1 = scmp.eq.s32.totalorder %s2428_s28, 0 }
   0xe   : > { %p187_p2 = scmp.lt.s32.totalorder %s2360_s24, 3  ;;  %s2362_s30 = smov [#allocation5]  }
   0xf   : > { %s200_s7 = sshll.u32 %s2362_s30, 4  ;;  %s2607_s3 = sld [smem:[#allocation21_spill]]  ;;  %s201_s7 = int_to_ptr.vmem [resolvable:$true] %s200_s7 }
  0x10   : > { %p2433_p3 = pnand %p1496_p0, %p187_p2  ;;  %s2609_s2 = sld [smem:[#allocation20_spill]] }
  0x11   : > { %s2363_s15 = smov [#allocation8]   ;;  %s2364_s17 = smov 64  }
  0x12   : > { %s198_s27 = sshll.u32 %s2605_s1, 4  ;;  %p2022_p4 = pneg %p2433_p3  ;;  %s199_s27 = int_to_ptr.hbm [resolvable:$true] %s198_s27 }
  0x13   : > { %s226_s16 = sshll.u32 %s2363_s15, 4  ;;  %s2365_s18 = smov 4   ;;  %s227_s16 = int_to_ptr.vmem [resolvable:$true] %s226_s16 }
  0x14   : > { %p2445_p6 = pnand %p2022_p4, %p46_p1  ;;  %s238_s25 = sshll.u32 %s2599_s4, 4  ;;  %s239_s25 = int_to_ptr.hbm [resolvable:$true] %s238_s25 }
  0x15   : > { %s224_s10 = sshll.u32 %s2607_s3, 4  ;;  %s2366_s26 = smov [#allocation7]   ;;  %s225_s10 = int_to_ptr.hbm [resolvable:$true] %s224_s10 }
  0x16   : > { %s213_s14 = sshll.u32 %s2609_s2, 4  ;;  %s215_s30 = sshll.u32 %s2366_s26, 4  ;;  %s214_s14 = int_to_ptr.hbm [resolvable:$true] %s213_s14  ;;  %s216_s30 = int_to_ptr.vmem [resolvable:$true] %s215_s30 }
  0x17   : > { %2025 = dma.hbm_to_vmem [thread:$0]  (!%p2445_p6), %s199_s27, 10240, %s201_s7, [#allocation6], %s2364_s17, %s2364_s17, %s2365_s18  }
  0x18   : > { %2031 = dma.hbm_to_vmem [thread:$0]  (!%p2445_p6), %s225_s10, 1024, %s227_s16, [#allocation9], %s2364_s17, %s2364_s17, %s2365_s18  }
  0x19   : > { %2028 = dma.hbm_to_vmem [thread:$0]  (!%p2445_p6), %s214_s14, 128, %s216_s30, [#allocation6]  }
  0x1a   : > { %s2367_s27 = smov [#allocation10]   ;;  %s253_s10 = sshll.u32 %s2600_s5, 4  ;;  %s254_s10 = int_to_ptr.hbm [resolvable:$true] %s253_s10 }
  0x1b   : > { %s240_s7 = sshll.u32 %s2367_s27, 4  ;;  %s2368_s12 = smov [#allocation11]   ;;  %s241_s7 = int_to_ptr.vmem [resolvable:$true] %s240_s7 }
  0x1c   : > { %2034 = dma.hbm_to_vmem [thread:$0]  (!%p2445_p6), %s239_s25, 1024, %s241_s7, [#allocation9], %s2364_s17, %s2364_s17, %s2365_s18  }
  0x1d   : > { %s255_s13 = sshll.u32 %s2368_s12, 4  ;;  %s1495_s14 = sadd.s32 4294967294, %s2360_s24   ;;  %s256_s13 = int_to_ptr.vmem [resolvable:$true] %s255_s13 }
  0x1e   : > { %2037 = dma.hbm_to_vmem [thread:$0]  (!%p2445_p6), %s254_s10, 16, %s256_s13, [#allocation12]  }
  0x1f   : > { %s2470_s15 = sadd.s32 1, %s2360_s24   ;;  %s32_s16 = sadd.s32 1, %s2356_s23 }
  0x20   : > { %s29_s19 = ssub.s32 %s2360_s24, %s2470_s15  ;;  %p39_p7 = scmp.ne.s32.totalorder %s2356_s23, %s2352_s22 }
  0x21   : > { %p30_p8 = scmp.eq.s32.totalorder %s29_s19, 0  ;;  %p40_p9 = scmp.eq.s32.totalorder %s2360_s24, 0 }
  0x22   : > { %p45_p10 = scmp.ne.s32.totalorder %s2352_s22, %s2348_s21  ;;  %p174_p11 = scmp.eq.s32.totalorder %s2428_s28, 1 }
  0x23   : > { %s2482_s17 = scalar_select %p30_p8, %s2356_s23, %s32_s16  }
  0x24   : > { %p41_p12 = por %p40_p9, %p39_p7  ;;  %p2486_p13 = por %p46_p1, %p45_p10 }
  0x25   : > { %p2490_p0 = por %p174_p11, %p39_p7  ;;  %p180_p2 = scmp.eq.s32.totalorder %s1495_s14, 1 }
  0x26   : > { %p2051_p4 = scmp.lt.s32.totalorder %s2360_s24, 2  ;;  %s266_s20 = sand.u32 1, %s2356_s23  }
  0x27   : > { %p2496_p6 = por %p180_p2, %p45_p10  ;;  %s1995_s26 = smul.u32 80, %s266_s20 }
  0x28   : > { %p2500_p8 = pnand %p2051_p4, %p41_p12  ;;  %s1996_s27 = smul.u32 80, %s2360_s24 }
  0x29   : > { %s270_s10 = scalar_lea.vmem [#allocation2], %s1995_s26  ;;  %s267_s14 = scalar_lea.sflag [#allocation3], %s266_s20 }
  0x2a   : > { %s275_s9 = scalar_lea.hbm %s2595_s0, %s1996_s27  ;;  %s279_s12 = sshll.u32 %s270_s10, 4  ;;  %s280_s12 = int_to_ptr.vmem [resolvable:$true] %s279_s12 }
  0x2b   : > { %s277_s13 = sshll.u32 %s275_s9, 4  ;;  %p2256_p9 = pneg %p2500_p8  ;;  %s278_s13 = int_to_ptr.hbm [resolvable:$true] %s277_s13 }
  0x2c   : > { %s2252_s16 = sshra.s32 %s278_s13, 4  ;;  %s2259_s3 = scalar_lea.hbm %s2595_s0, 160  ;;  %s2253_s16 = int_to_ptr.hbm [resolvable:$true] %s2252_s16 }
  0x2d   : > { %s2254_s19 = scalar_lea.hbm %s2253_s16, 80  ;;  %p2260_p12 = scmp.lt.s32.totalorder %s2253_s16, %s2595_s0 }
  0x2e   : > { %p2255_p7 = scmp.ne.s32.totalorder %s2253_s16, %s2254_s19  ;;  %p2261_p2 = scmp.lt.s32.totalorder %s2259_s3, %s2254_s19 }
  0x30   : > { %p2257_p10 = pnand %p2256_p9, %p2255_p7  ;;  %p2262_p4 = por %p2261_p2, %p2260_p12 }
  0x32   : > { %p2258_p11 = pneg %p2257_p10 }
  0x34   : > { %p2263_p5 = pnand %p2262_p4, %p2258_p11 }
  0x36   : > { %2266 = shalt.err (!%p2263_p5)
}
  0x37   : > { %2041 = dma.hbm_to_vmem [thread:$0]  (!%p2500_p8), %s278_s13, 1280, %s280_s12, %s267_s14  }
  0x38   : > { %288 = sbr.rel (%p2433_p3) target bundleno = 892 (0x37c), region = 44  ;;  %s2521_s20 = sand.u32 (!%p2433_p3), 1, %s2352_s22  }
  0x39   : > { %s1997_s1 = smul.u32 (!%p2433_p3), 80, %s2521_s20  ;;  %s291_s2 = scalar_lea.sflag (!%p2433_p3), [#allocation3], %s2521_s20 }
  0x3b   : > { %s2525_s26 = scalar_lea.vmem (!%p2433_p3), [#allocation2], %s1997_s1 }
  0x3d   : > { %2327 = dma.done.wait (%p2486_p13), %s291_s2, 1280  }
  0x3e   : > { %2329 = vsyncadd (%p2486_p13), %s291_s2, 4294966016 }
  0x3f   : > { %2331 = dma.done.wait (%p46_p1), [#allocation6], 10368  }
  0x40   : > { %2333 = vsyncadd (%p46_p1), [#allocation6], 4294956928 }
  0x41   : > { %2335 = dma.done.wait (%p46_p1), [#allocation9], 2048  }
  0x42   : > { %2337 = vsyncadd (%p46_p1), [#allocation9], 4294965248 }
  0x43   : > { %2339 = dma.done.wait (%p46_p1), [#allocation12], 16  }
  0x44   : > { %2341 = vsyncadd (%p46_p1), [#allocation12], 4294967280  ;;  %v1906_v0 = vld [vmem:[#allocation5 + $0x38] sm:$0xff]  ;;  %v1905_v4 = vld [vmem:[#allocation5 + $0x30] sm:$0xff]  ;;  %s1896_s3 = sshll.u32 %s2428_s28, 3  ;;  %s1510_s29 = sshll.u32 %s2521_s20, 3 }
  0x45   : > { %v1914_v1 = vld [vmem:[#allocation5 + $0x78] sm:$0xff]  ;;  %1011 = vmatpush.bf16.msra.mxu0 %v1906_v0  ;;  %v1913_v5 = vld [vmem:[#allocation5 + $0x70] sm:$0xff]  ;;  %v1904_v8 = vld [vmem:[#allocation5 + $0x28] sm:$0xff]  ;;  %s1372_s8 = scalar_lea.hbm %s2601_s6, %s1896_s3  ;;  %s348_s9 = scalar_lea.vmem [#allocation13], %s1510_s29 }
  0x46   : > { %v1922_v2 = vld [vmem:[#allocation5 + $0xb8] sm:$0xff]  ;;  %1024 = vmatpush.bf16.msra.mxu1 %v1914_v1  ;;  %v1921_v6 = vld [vmem:[#allocation5 + $0xb0] sm:$0xff]  ;;  %v1912_v9 = vld [vmem:[#allocation5 + $0x68] sm:$0xff]  ;;  %s1374_s10 = sshll.u32 %s348_s9, 4  ;;  %s1376_s12 = sshll.u32 %s1372_s8, 4  ;;  %s1375_s10 = int_to_ptr.vmem [resolvable:$true] %s1374_s10  ;;  %s1377_s12 = int_to_ptr.hbm [resolvable:$true] %s1376_s12 }
  0x47   : > { %v1930_v3 = vld [vmem:[#allocation5 + $0xf8] sm:$0xff]  ;;  %1037 = vmatpush.bf16.msra.mxu2 %v1922_v2  ;;  %v1929_v7 = vld [vmem:[#allocation5 + $0xf0] sm:$0xff]  ;;  %v1920_v10 = vld [vmem:[#allocation5 + $0xa8] sm:$0xff]  ;;  %s1362_s13 = scalar_lea.sflag [#allocation4], %s2521_s20  ;;  %s2296_s14 = sshra.s32 %s1377_s12, 4  ;;  %s2297_s14 = int_to_ptr.hbm [resolvable:$true] %s2296_s14 }
  0x48   : > { %1050 = vmatpush.bf16.msra.mxu3 %v1930_v3  ;;  %v1928_v11 = vld [vmem:[#allocation5 + $0xe8] sm:$0xff]  ;;  %v1903_v12 = vld [vmem:[#allocation5 + $0x20] sm:$0xff]  ;;  %v1902_v16 = vld [vmem:[#allocation5 + $0x18] sm:$0xff]  ;;  %s2298_s16 = scalar_lea.hbm %s2297_s14, 8  ;;  %s2302_s7 = scalar_lea.hbm %s2601_s6, 16 }
  0x49   : > { %1012 = vmatpush.bf16.msra.mxu0 %v1905_v4  ;;  %v1911_v13 = vld [vmem:[#allocation5 + $0x60] sm:$0xff]  ;;  %v1910_v17 = vld [vmem:[#allocation5 + $0x58] sm:$0xff]  ;;  %v1901_v20 = vld [vmem:[#allocation5 + $0x10] sm:$0xff]  ;;  %p2299_p1 = scmp.ne.s32.totalorder %s2297_s14, %s2298_s16  ;;  %p2303_p13 = scmp.lt.s32.totalorder %s2297_s14, %s2601_s6 }
  0x4a   : > { %1025 = vmatpush.bf16.msra.mxu1 %v1913_v5  ;;  %v1919_v14 = vld [vmem:[#allocation5 + $0xa0] sm:$0xff]  ;;  %v1918_v18 = vld [vmem:[#allocation5 + $0x98] sm:$0xff]  ;;  %v1909_v21 = vld [vmem:[#allocation5 + $0x50] sm:$0xff]  ;;  %p2304_p8 = scmp.lt.s32.totalorder %s2302_s7, %s2298_s16 }
  0x4b   : > { %1038 = vmatpush.bf16.msra.mxu2 %v1921_v6  ;;  %v1927_v15 = vld [vmem:[#allocation5 + $0xe0] sm:$0xff]  ;;  %v1926_v19 = vld [vmem:[#allocation5 + $0xd8] sm:$0xff]  ;;  %v1917_v22 = vld [vmem:[#allocation5 + $0x90] sm:$0xff]  ;;  %p2300_p3 = pnand %p2299_p1, %p2490_p0 }
  0x4c   : > { %1051 = vmatpush.bf16.msra.mxu3 %v1929_v7  ;;  %v1925_v23 = vld [vmem:[#allocation5 + $0xd0] sm:$0xff]  ;;  %v1900_v24 = vld [vmem:[#allocation5 + $0x8] sm:$0xff]  ;;  %v1899_v28 = vld [vmem:[#allocation5] sm:$0xff]  ;;  %p2305_p7 = por %p2304_p8, %p2303_p13 }
  0x4d   : > { %1013 = vmatpush.bf16.msra.mxu0 %v1904_v8  ;;  %v1908_v25 = vld [vmem:[#allocation5 + $0x48] sm:$0xff]  ;;  %v1907_v29 = vld [vmem:[#allocation5 + $0x40] sm:$0xff]  ;;  %v1938_v30 = vld [vmem:[#allocation5 + $0x138] sm:$0xff]  ;;  %p2301_p5 = pneg %p2300_p3 }
  0x4e   : > { %1026 = vmatpush.bf16.msra.mxu1 %v1912_v9  ;;  %v1916_v26 = vld [vmem:[#allocation5 + $0x88] sm:$0xff]  ;;  %v1946_v31 = vld [vmem:[#allocation5 + $0x178] sm:$0xff]  ;;  %v349_v32 = vld [vmem:[%s2525_s26] sm:$0xff] }
  0x4f   : > { %1039 = vmatpush.bf16.msra.mxu2 %v1920_v10  ;;  %v1924_v27 = vld [vmem:[#allocation5 + $0xc8] sm:$0xff]  ;;  %v1915_v34 = vld [vmem:[#allocation5 + $0x80] sm:$0xff]  ;;  %v1954_v35 = vld [vmem:[#allocation5 + $0x1b8] sm:$0xff]  ;;  %v359_v40 = vpack.c.bf16 %v349_v32, %v349_v32  ;;  %p2306_p9 = pnand %p2305_p7, %p2301_p5 }
  0x50   : > { %1052 = vmatpush.bf16.msra.mxu3 %v1928_v11  ;;  %v350_v33 = vld [vmem:[%s2525_s26 + $0x8] sm:$0xff]  ;;  %v1923_v36 = vld [vmem:[#allocation5 + $0xc0] sm:$0xff]  ;;  %v352_v39 = vld [vmem:[%s2525_s26 + $0x18] sm:$0xff] }
  0x51   : > { %1014 = vmatpush.bf16.msra.mxu0 %v1903_v12  ;;  %v1962_v37 = vld [vmem:[#allocation5 + $0x1f8] sm:$0xff]  ;;  %v351_v38 = vld [vmem:[%s2525_s26 + $0x10] sm:$0xff]  ;;  %v360_v41 = vpack.c.bf16 %v350_v33, %v350_v33  ;;  %v362_v45 = vpack.c.bf16 %v352_v39, %v352_v39  ;;  %v1936_v48 = vld [vmem:[#allocation5 + $0x128] sm:$0xff] }
  0x52   : > { %1027 = vmatpush.bf16.msra.mxu1 %v1911_v13  ;;  %v1937_v42 = vld [vmem:[#allocation5 + $0x130] sm:$0xff]  ;;  %v361_v44 = vpack.c.bf16 %v351_v38, %v351_v38  ;;  %v1944_v49 = vld [vmem:[#allocation5 + $0x168] sm:$0xff]  ;;  %v1935_v52 = vld [vmem:[#allocation5 + $0x120] sm:$0xff] }
  0x53   : > { %1040 = vmatpush.bf16.msra.mxu2 %v1919_v14  ;;  %v1945_v43 = vld [vmem:[#allocation5 + $0x170] sm:$0xff]  ;;  %v1952_v50 = vld [vmem:[#allocation5 + $0x1a8] sm:$0xff]  ;;  %v1943_v53 = vld [vmem:[#allocation5 + $0x160] sm:$0xff] }
  0x54   : > { %1053 = vmatpush.bf16.msra.mxu3 %v1927_v15  ;;  %v1953_v46 = vld [vmem:[#allocation5 + $0x1b0] sm:$0xff]  ;;  %v1960_v51 = vld [vmem:[#allocation5 + $0x1e8] sm:$0xff]  ;;  %v1951_v54 = vld [vmem:[#allocation5 + $0x1a0] sm:$0xff] }
  0x55   : > { %1015 = vmatpush.bf16.msra.mxu0 %v1902_v16  ;;  %v1961_v47 = vld [vmem:[#allocation5 + $0x1f0] sm:$0xff]  ;;  %v1959_v55 = vld [vmem:[#allocation5 + $0x1e0] sm:$0xff]  ;;  %v1934_v56 = vld [vmem:[#allocation5 + $0x118] sm:$0xff] }
  0x56   : > { %1028 = vmatpush.bf16.msra.mxu1 %v1910_v17  ;;  %v1942_v57 = vld [vmem:[#allocation5 + $0x158] sm:$0xff]  ;;  %v1933_v60 = vld [vmem:[#allocation5 + $0x110] sm:$0xff]  ;;  %v1932_v0 = vld [vmem:[#allocation5 + $0x108] sm:$0xff] }
  0x57   : > { %1041 = vmatpush.bf16.msra.mxu2 %v1918_v18  ;;  %v1950_v58 = vld [vmem:[#allocation5 + $0x198] sm:$0xff]  ;;  %v1941_v61 = vld [vmem:[#allocation5 + $0x150] sm:$0xff]  ;;  %v1940_v1 = vld [vmem:[#allocation5 + $0x148] sm:$0xff] }
  0x58   : > { %1054 = vmatpush.bf16.msra.mxu3 %v1926_v19  ;;  %v1958_v59 = vld [vmem:[#allocation5 + $0x1d8] sm:$0xff]  ;;  %v1949_v62 = vld [vmem:[#allocation5 + $0x190] sm:$0xff]  ;;  %v1948_v2 = vld [vmem:[#allocation5 + $0x188] sm:$0xff] }
  0x59   : > { %1016 = vmatpush.bf16.msra.mxu0 %v1901_v20  ;;  %v1957_v63 = vld [vmem:[#allocation5 + $0x1d0] sm:$0xff]  ;;  %v1956_v3 = vld [vmem:[#allocation5 + $0x1c8] sm:$0xff]  ;;  %v1931_v4 = vld [vmem:[#allocation5 + $0x100] sm:$0xff] }
  0x5a   : > { %1029 = vmatpush.bf16.msra.mxu1 %v1909_v21  ;;  %v1939_v5 = vld [vmem:[#allocation5 + $0x140] sm:$0xff]  ;;  %v354_v7 = vld [vmem:[%s2525_s26 + $0x28] sm:$0xff]  ;;  %v356_v14 = vld [vmem:[%s2525_s26 + $0x38] sm:$0xff] }
  0x5b   : > { %1042 = vmatpush.bf16.msra.mxu2 %v1917_v22  ;;  %v353_v6 = vld [vmem:[%s2525_s26 + $0x20] sm:$0xff]  ;;  %v1970_v8 = vld [vmem:[#allocation5 + $0x238] sm:$0xff]  ;;  %v355_v12 = vld [vmem:[%s2525_s26 + $0x30] sm:$0xff]  ;;  %v364_v15 = vpack.c.bf16 %v354_v7, %v354_v7  ;;  %v366_v19 = vpack.c.bf16 %v356_v14, %v356_v14 }
  0x5c   : > { %1055 = vmatpush.bf16.msra.mxu3 %v1925_v23  ;;  %v1978_v9 = vld [vmem:[#allocation5 + $0x278] sm:$0xff]  ;;  %v1947_v10 = vld [vmem:[#allocation5 + $0x180] sm:$0xff]  ;;  %v363_v13 = vpack.c.bf16 %v353_v6, %v353_v6  ;;  %v1969_v16 = vld [vmem:[#allocation5 + $0x230] sm:$0xff]  ;;  %v365_v18 = vpack.c.bf16 %v355_v12, %v355_v12 }
  0x5d   : > { %1017 = vmatpush.bf16.msra.mxu0 %v1900_v24  ;;  %v1955_v11 = vld [vmem:[#allocation5 + $0x1c0] sm:$0xff]  ;;  %v1977_v17 = vld [vmem:[#allocation5 + $0x270] sm:$0xff]  ;;  %v1968_v20 = vld [vmem:[#allocation5 + $0x228] sm:$0xff] }
  0x5e   : > { %1030 = vmatpush.bf16.msra.mxu1 %v1908_v25  ;;  %v1976_v21 = vld [vmem:[#allocation5 + $0x268] sm:$0xff]  ;;  %v1967_v22 = vld [vmem:[#allocation5 + $0x220] sm:$0xff]  ;;  %v1966_v24 = vld [vmem:[#allocation5 + $0x218] sm:$0xff] }
  0x5f   : > { %1043 = vmatpush.bf16.msra.mxu2 %v1916_v26  ;;  %v1975_v23 = vld [vmem:[#allocation5 + $0x260] sm:$0xff]  ;;  %v1974_v25 = vld [vmem:[#allocation5 + $0x258] sm:$0xff]  ;;  %v1965_v26 = vld [vmem:[#allocation5 + $0x210] sm:$0xff] }
  0x60   : > { %1056 = vmatpush.bf16.msra.mxu3 %v1924_v27  ;;  %v1973_v27 = vld [vmem:[#allocation5 + $0x250] sm:$0xff]  ;;  %v358_v33 = vld [vmem:[%s2525_s26 + $0x48] sm:$0xff] }
  0x61   : > { %1018 = vmatpush.bf16.msra.mxu0 %v1899_v28  ;;  %v1964_v28 = vld [vmem:[#allocation5 + $0x208] sm:$0xff]  ;;  %v357_v32 = vld [vmem:[%s2525_s26 + $0x40] sm:$0xff]  ;;  %v1985_v6 = vld [vmem:[#allocation8 + $0x30] sm:$0xff] }
  0x62   : > { %1031 = vmatpush.bf16.msra.mxu1 %v1907_v29  ;;  %v1972_v29 = vld [vmem:[#allocation5 + $0x248] sm:$0xff]  ;;  %v1984_v7 = vld [vmem:[#allocation8 + $0x28] sm:$0xff] }
  0x63   : > { %1044 = vmatpush.bf16.msra.mxu2 %v1915_v34  ;;  %v367_v34 = vpack.c.bf16 %v357_v32, %v357_v32  ;;  %v1980_v12 = vld [vmem:[#allocation8 + $0x8] sm:$0xff] }
  0x64   : > { %1057 = vmatpush.bf16.msra.mxu3 %v1923_v36  ;;  %1019 = vmatmul.bf16.vlgmr.msra.gmra.mxu0 %v359_v40 }
  0x65   : > { %1063 = vmatpush.bf16.msrb.mxu0 %v1938_v30  ;;  %1032 = vmatmul.bf16.vlgmr.msra.gmra.mxu1 %v360_v41  ;;  %v1963_v30 = vld [vmem:[#allocation5 + $0x200] sm:$0xff] }
  0x66   : > { %1076 = vmatpush.bf16.msrb.mxu1 %v1946_v31  ;;  %1045 = vmatmul.bf16.vlgmr.msra.gmra.mxu2 %v361_v44  ;;  %v1971_v31 = vld [vmem:[#allocation5 + $0x240] sm:$0xff] }
  0x67   : > { %1089 = vmatpush.bf16.msrb.mxu2 %v1954_v35  ;;  %1058 = vmatmul.bf16.vlgmr.msra.gmra.mxu3 %v362_v45  ;;  %v368_v35 = vpack.c.bf16 %v358_v33, %v358_v33  ;;  %v2553_v44 = vld [vmem:[#allocation7] sm:$0x3f] }
  0x68   : > { %1102 = vmatpush.bf16.msrb.mxu3 %v1962_v37  ;;  %v530_v45 = vperm.slane %v2553_v44, 0 }
  0x69   : > { %1064 = vmatpush.bf16.msrb.mxu0 %v1937_v42 }
  0x6a   : > { %1077 = vmatpush.bf16.msrb.mxu1 %v1945_v43 }
  0x6b   : > { %1090 = vmatpush.bf16.msrb.mxu2 %v1953_v46 }
  0x6c   : > { %1103 = vmatpush.bf16.msrb.mxu3 %v1961_v47 }
  0x6d   : > { %1065 = vmatpush.bf16.msrb.mxu0 %v1936_v48 }
  0x6e   : > { %1078 = vmatpush.bf16.msrb.mxu1 %v1944_v49 }
  0x6f   : > { %1091 = vmatpush.bf16.msrb.mxu2 %v1952_v50 }
  0x70   : > { %1104 = vmatpush.bf16.msrb.mxu3 %v1960_v51 }
  0x71   : > { %1066 = vmatpush.bf16.msrb.mxu0 %v1935_v52 }
  0x72   : > { %1079 = vmatpush.bf16.msrb.mxu1 %v1943_v53 }
  0x73   : > { %1092 = vmatpush.bf16.msrb.mxu2 %v1951_v54 }
  0x74   : > { %1105 = vmatpush.bf16.msrb.mxu3 %v1959_v55 }
  0x75   : > { %1067 = vmatpush.bf16.msrb.mxu0 %v1934_v56 }
  0x76   : > { %1080 = vmatpush.bf16.msrb.mxu1 %v1942_v57 }
  0x77   : > { %1093 = vmatpush.bf16.msrb.mxu2 %v1950_v58 }
  0x78   : > { %1106 = vmatpush.bf16.msrb.mxu3 %v1958_v59 }
  0x79   : > { %1068 = vmatpush.bf16.msrb.mxu0 %v1933_v60 }
  0x7a   : > { %1081 = vmatpush.bf16.msrb.mxu1 %v1941_v61 }
  0x7b   : > { %1094 = vmatpush.bf16.msrb.mxu2 %v1949_v62 }
  0x7c   : > { %1107 = vmatpush.bf16.msrb.mxu3 %v1957_v63 }
  0x7d   : > { %1069 = vmatpush.bf16.msrb.mxu0 %v1932_v0 }
  0x7e   : > { %1082 = vmatpush.bf16.msrb.mxu1 %v1940_v1 }
  0x7f   : > { %1095 = vmatpush.bf16.msrb.mxu2 %v1948_v2 }
  0x80   : > { %1108 = vmatpush.bf16.msrb.mxu3 %v1956_v3 }
  0x81   : > { %1070 = vmatpush.bf16.msrb.mxu0 %v1931_v4 }
  0x82   : > { %1083 = vmatpush.bf16.msrb.mxu1 %v1939_v5  ;;  %v1986_v5 = vld [vmem:[#allocation8 + $0x38] sm:$0xff] }
  0x83   : > { %1096 = vmatpush.bf16.msrb.mxu2 %v1947_v10 }
  0x84   : > { %1109 = vmatpush.bf16.msrb.mxu3 %v1955_v11  ;;  %1071 = vmatmul.bf16.vlgmr.msrb.gmra.mxu0 %v363_v13  ;;  %v1981_v11 = vld [vmem:[#allocation8 + $0x10] sm:$0xff] }
  0x85   : > { %1115 = vmatpush.bf16.msra.mxu0 %v1970_v8  ;;  %1084 = vmatmul.bf16.vlgmr.msrb.gmra.mxu1 %v364_v15  ;;  %v1983_v8 = vld [vmem:[#allocation8 + $0x20] sm:$0xff] }
  0x86   : > { %1128 = vmatpush.bf16.msra.mxu1 %v1978_v9  ;;  %1097 = vmatmul.bf16.vlgmr.msrb.gmra.mxu2 %v365_v18  ;;  %v1982_v9 = vld [vmem:[#allocation8 + $0x18] sm:$0xff]  ;;  %v1979_v15 = vld [vmem:[#allocation8] sm:$0xff] }
  0x87   : > { %1110 = vmatmul.bf16.vlgmr.msrb.gmra.mxu3 %v366_v19  ;;  %1236 = vmatpush.bf16.msra.mxu2 %v1986_v5 }
  0x89   : > { %1116 = vmatpush.bf16.msra.mxu0 %v1969_v16 }
  0x8a   : > { %1129 = vmatpush.bf16.msra.mxu1 %v1977_v17 }
  0x8b   : > { %1237 = vmatpush.bf16.msra.mxu2 %v1985_v6 }
  0x8d   : > { %1117 = vmatpush.bf16.msra.mxu0 %v1968_v20 }
  0x8e   : > { %1130 = vmatpush.bf16.msra.mxu1 %v1976_v21 }
  0x8f   : > { %1238 = vmatpush.bf16.msra.mxu2 %v1984_v7 }
  0x91   : > { %1118 = vmatpush.bf16.msra.mxu0 %v1967_v22 }
  0x92   : > { %1131 = vmatpush.bf16.msra.mxu1 %v1975_v23 }
  0x93   : > { %1239 = vmatpush.bf16.msra.mxu2 %v1983_v8 }
  0x95   : > { %1119 = vmatpush.bf16.msra.mxu0 %v1966_v24 }
  0x96   : > { %1132 = vmatpush.bf16.msra.mxu1 %v1974_v25 }
  0x97   : > { %1240 = vmatpush.bf16.msra.mxu2 %v1982_v9 }
  0x99   : > { %1120 = vmatpush.bf16.msra.mxu0 %v1965_v26  ;;  %v1162_v26 = vperm.slane %v2553_v44, 1 }
  0x9a   : > { %1133 = vmatpush.bf16.msra.mxu1 %v1973_v27 }
  0x9b   : > { %1241 = vmatpush.bf16.msra.mxu2 %v1981_v11  ;;  %v2097_v11 = vld [vmem:[#allocation11] ss:$0 sm:$0xff] }
  0x9d   : > { %1121 = vmatpush.bf16.msra.mxu0 %v1964_v28 }
  0x9e   : > { %1134 = vmatpush.bf16.msra.mxu1 %v1972_v29 }
  0x9f   : > { %1242 = vmatpush.bf16.msra.mxu2 %v1980_v12 }
  0xa1   : > { %1122 = vmatpush.bf16.msra.mxu0 %v1963_v30  ;;  %v1166_v30 = vperm.slane %v2553_v44, 2 }
  0xa2   : > { %1135 = vmatpush.bf16.msra.mxu1 %v1971_v31 }
  0xa3   : > { %1243 = vmatpush.bf16.msra.mxu2 %v1979_v15 }
  0xa4   : > { %1123 = vmatmul.bf16.vlgmr.msra.gmra.mxu0 %v367_v34 }
  0xa5   : > { %1136 = vmatmul.bf16.vlgmr.msra.gmra.mxu1 %v368_v35 }
  0xe1   : > { %v1020_v36 = vpop.f32.mrf.mxu0 }
  0xe2   : > { %v1033_v37 = vpop.f32.mrf.mxu1  ;;  %v1021_v46 = vadd.f32 %v1020_v36, %v530_v45  ;;  %v1992_v45 = vld [vmem:[#allocation10 + $0x28] sm:$0xff] }
  0xe4   : > { %v1034_v49 = vadd.f32 %v1033_v37, %v1021_v46  ;;  %v1187_v37 = vperm.slane %v2553_v44, 3  ;;  %v1991_v46 = vld [vmem:[#allocation10 + $0x20] sm:$0xff] }
  0xe9   : > { %v1046_v38 = vpop.f32.mrf.mxu2  ;;  %v1022_v40 = vpop.f32.mrf.mxu0 }
  0xea   : > { %v1059_v39 = vpop.f32.mrf.mxu3  ;;  %v1035_v41 = vpop.f32.mrf.mxu1  ;;  %v1047_v50 = vadd.f32 %v1046_v38, %v1034_v49  ;;  %v1989_v49 = vld [vmem:[#allocation10 + $0x10] sm:$0xff] }
  0xec   : > { %v1060_v55 = vadd.f32 %v1059_v39, %v1047_v50  ;;  %v1988_v50 = vld [vmem:[#allocation10 + $0x8] sm:$0xff] }
  0xf1   : > { %v1048_v42 = vpop.f32.mrf.mxu2 }
  0xf2   : > { %v1061_v43 = vpop.f32.mrf.mxu3  ;;  %v1994_v42 = vld [vmem:[#allocation10 + $0x38] sm:$0xff] }
  0xf3   : > { %1347 = vmatpush.bf16.msra.mxu3 %v1994_v42  ;;  %v1993_v43 = vld [vmem:[#allocation10 + $0x30] sm:$0xff] }
  0xf7   : > { %1348 = vmatpush.bf16.msra.mxu3 %v1993_v43 }
  0xfb   : > { %1349 = vmatpush.bf16.msra.mxu3 %v1992_v45 }
  0xff   : > { %1350 = vmatpush.bf16.msra.mxu3 %v1991_v46 }
 0x101   : > { %v1072_v47 = vpop.f32.mrf.mxu0 }
 0x102   : > { %v1085_v48 = vpop.f32.mrf.mxu1  ;;  %v1073_v56 = vadd.f32 %v1072_v47, %v1060_v55  ;;  %v1990_v47 = vld [vmem:[#allocation10 + $0x18] sm:$0xff] }
 0x103   : > { %1351 = vmatpush.bf16.msra.mxu3 %v1990_v47 }
 0x104   : > { %v1086_v59 = vadd.f32 %v1085_v48, %v1073_v56 }
 0x107   : > { %1352 = vmatpush.bf16.msra.mxu3 %v1989_v49 }
 0x109   : > { %v1074_v51 = vpop.f32.mrf.mxu0  ;;  %v1098_v53 = vpop.f32.mrf.mxu2 }
 0x10a   : > { %v1087_v52 = vpop.f32.mrf.mxu1  ;;  %v1111_v54 = vpop.f32.mrf.mxu3  ;;  %v1099_v60 = vadd.f32 %v1098_v53, %v1086_v59  ;;  %v1987_v53 = vld [vmem:[#allocation10] sm:$0xff] }
 0x10b   : > { %1353 = vmatpush.bf16.msra.mxu3 %v1988_v50 }
 0x10c   : > { %v1112_v61 = vadd.f32 %v1111_v54, %v1099_v60 }
 0x10f   : > { %1354 = vmatpush.bf16.msra.mxu3 %v1987_v53 }
 0x111   : > { %v1100_v57 = vpop.f32.mrf.mxu2 }
 0x112   : > { %v1113_v58 = vpop.f32.mrf.mxu3 }
 0x121   : > { %v1124_v62 = vpop.f32.mrf.mxu0 }
 0x122   : > { %v1137_v63 = vpop.f32.mrf.mxu1  ;;  %v1125_v0 = vadd.f32 %v1124_v62, %v1112_v61 }
 0x124   : > { %v1138_v1 = vadd.f32 %v1137_v63, %v1125_v0  ;;  %v1270_v0 = vperm.slane %v2553_v44, 4 }
 0x126   : > { %1141 = vadd.xlane.f32.xlu0 %v1138_v1  ;;  %v1143_v4 = vmul.f32 %v1138_v1, %v1138_v1 }
 0x129   : > { %v1126_v2 = vpop.f32.mrf.mxu0 }
 0x12a   : > { %v1139_v3 = vpop.f32.mrf.mxu1 }
 0x12e   : > { %1144 = vadd.xlane.f32.xlu0 %v1143_v4  ;;  %v1274_v4 = vperm.slane %v2553_v44, 5 }
 0x199   : > { %v1142_v10 = vpop.xlane.xlu0 %1141 }
 0x19a   : > { %v1146_v13 = vmul.f32 0.0078125, %v1142_v10 }
 0x19c   : > { %v1148_v16 = vmul.f32 %v1146_v13, %v1146_v13 }
 0x1a1   : > { %v1145_v14 = vpop.xlane.xlu0 %1144 }
 0x1a2   : > { %v1147_v17 = vmul.f32 0.0078125, %v1145_v14 }
 0x1a4   : > { %v1149_v18 = vsub.f32 %v1147_v17, %v1148_v16 }
 0x1a6   : > { %v1150_v19 = vmax.f32 %v1149_v18, 0.0 }
 0x1a8   : > { %v1151_v20 = vadd.f32 1e-05, %v1150_v19 }
 0x1aa   : > { %2098 = vrsqrt.f32 %v1151_v20  ;;  %vm1158_vm1 = vweird.f32 %v1151_v20 }
 0x1b0   : > { %v2099_v21 = vpop.eup %2098 }
 0x1b1   : > { %v1153_v22 = vmul.f32 %v2099_v21, %v1151_v20  ;;  %vm1159_vm0 = vweird.f32 %v2099_v21 }
 0x1b2   : > { %vm1160_vm2 = vmor %vm1158_vm1, %vm1159_vm0 }
 0x1b3   : > { %v1154_v23 = vmul.f32 %v2099_v21, %v1153_v22 }
 0x1b5   : > { %v1155_v24 = vmul.f32 0.5, %v1154_v23 }
 0x1b7   : > { %v1156_v25 = vsub.f32 1.5, %v1155_v24 }
 0x1b9   : > { %v1157_v27 = vmul.f32 %v2099_v21, %v1156_v25 }
 0x1bb   : > { %v1161_v28 = vsel %vm1160_vm2, %v2099_v21, %v1157_v27 }
 0x1bc   : > { %v1163_v29 = vmul.f32 %v1162_v26, %v1161_v28 }
 0x1be   : > { %v1165_v31 = vmul.f32 %v1163_v29, %v1146_v13  ;;  %v1164_v32 = vmul.f32 %v1163_v29, %v1138_v1 }
 0x1c0   : > { %v1167_v33 = vsub.f32 %v1166_v30, %v1165_v31 }
 0x1c2   : > { %v1168_v34 = vadd.f32 %v1167_v33, %v1164_v32 }
 0x1c4   : > { %v1169_v35 = vmax.f32 %v1168_v34, 0.0 }
 0x1c6   : > { %v1170_v36 = vpack.c.bf16 %v1169_v35, %v1169_v35 }
 0x1c8   : > { %1244 = vmatmul.bf16.vlgmr.msra.gmra.mxu2 %v1170_v36 }
 0x24b   : > { %v1245_v38 = vpop.f32.mrf.mxu2 }
 0x24c   : > { %v1246_v39 = vadd.f32 %v1245_v38, %v1187_v37 }
 0x24e   : > { %1249 = vadd.xlane.f32.xlu1 %v1246_v39  ;;  %v1251_v41 = vmul.f32 %v1246_v39, %v1246_v39 }
 0x253   : > { %v1247_v40 = vpop.f32.mrf.mxu2 }
 0x256   : > { %1252 = vadd.xlane.f32.xlu1 %v1251_v41 }
 0x2c1   : > { %v1250_v48 = vpop.xlane.xlu1 %1249 }
 0x2c2   : > { %v1254_v51 = vmul.f32 0.0078125, %v1250_v48 }
 0x2c4   : > { %v1256_v54 = vmul.f32 %v1254_v51, %v1254_v51 }
 0x2c9   : > { %v1253_v52 = vpop.xlane.xlu1 %1252 }
 0x2ca   : > { %v1255_v55 = vmul.f32 0.0078125, %v1253_v52 }
 0x2cc   : > { %v1257_v56 = vsub.f32 %v1255_v55, %v1256_v54 }
 0x2ce   : > { %v1258_v57 = vmax.f32 %v1257_v56, 0.0 }
 0x2d0   : > { %v1259_v58 = vadd.f32 1e-05, %v1258_v57 }
 0x2d2   : > { %2100 = vrsqrt.f32 %v1259_v58  ;;  %vm1266_vm4 = vweird.f32 %v1259_v58 }
 0x2d8   : > { %v2101_v59 = vpop.eup %2100 }
 0x2d9   : > { %v1261_v60 = vmul.f32 %v2101_v59, %v1259_v58  ;;  %vm1267_vm3 = vweird.f32 %v2101_v59 }
 0x2da   : > { %vm1268_vm5 = vmor %vm1266_vm4, %vm1267_vm3 }
 0x2db   : > { %v1262_v61 = vmul.f32 %v2101_v59, %v1261_v60 }
 0x2dd   : > { %v1263_v62 = vmul.f32 0.5, %v1262_v61 }
 0x2df   : > { %v1264_v63 = vsub.f32 1.5, %v1263_v62 }
 0x2e1   : > { %v1265_v1 = vmul.f32 %v2101_v59, %v1264_v63 }
 0x2e3   : > { %v1269_v2 = vsel %vm1268_vm5, %v2101_v59, %v1265_v1 }
 0x2e4   : > { %v1271_v3 = vmul.f32 %v1270_v0, %v1269_v2 }
 0x2e6   : > { %v1273_v5 = vmul.f32 %v1271_v3, %v1254_v51  ;;  %v1272_v6 = vmul.f32 %v1271_v3, %v1246_v39 }
 0x2e8   : > { %v1275_v7 = vsub.f32 %v1274_v4, %v1273_v5 }
 0x2ea   : > { %v1276_v8 = vadd.f32 %v1275_v7, %v1272_v6 }
 0x2ec   : > { %v1277_v9 = vmax.f32 %v1276_v8, 0.0 }
 0x2ee   : > { %v1278_v10 = vpack.c.bf16 %v1277_v9, %v1277_v9 }
 0x2f0   : > { %1355 = vmatmul.bf16.vlgmr.msra.gmra.mxu3 %v1278_v10 }
 0x373   : > { %v1356_v44 = vpop.f32.mrf.mxu3 }
 0x374   : > { %v1357_v12 = vadd.f32 %v2097_v11, %v1356_v44 }
 0x376   : > { %1360 = vst [vmem:[%s348_s9] sm:$0xff] %v1357_v12 }
 0x377   : > { %2309 = shalt.err (!%p2306_p9)
}
 0x378   : > { %2020 = dma.vmem_to_hbm [thread:$0]  (%p2490_p0), %s1375_s10, 128, %s1377_s12, %s1362_s13  }
 0x37b   : > { %v1358_v13 = vpop.f32.mrf.mxu3 }
 0x37c PF: > { %s1388_s20 = sand.u32 1, %s2348_s21   ;;  %p2614_p10 = scmp.ge.s32.totalorder %s2360_s24, 2 }
 0x37d   : > { %s1389_s2 = scalar_lea.sflag [#allocation4], %s1388_s20 }
 0x37e   : > { %p2043_p11 = pnand %p2614_p10, %p2496_p6 }
 0x380   : > { %p2044_p12 = pneg %p2043_p11 }
 0x382   : > { %2343 = dma.done.wait (%p2044_p12), %s1389_s2, 128  }
 0x383   : > { %2345 = vsyncadd (%p2044_p12), %s1389_s2, 4294967168  ;;  %p22_p2 = scmp.ge.s32.totalorder %s2470_s15, 4   ;;  %s2615_s21 = smov %s2352_s22 }
 0x384   : > { %s2616_s22 = smov %s2356_s23  ;;  %s2617_s23 = smov %s2482_s17 }
 0x385   : > { %s2618_s24 = smov %s2470_s15  ;;  %24 = sbr.rel (!%p22_p2) target bundleno = 12 (0xc), region = 109 }
 0x38a   :  { %1395 = vsyncpa [#allocation3], 1 }
 0x38b   :  { %1397 = vsyncpa [#allocation3 + $0x1], 1 }
 0x38c   :  { %1398 = vsyncpa [#allocation6], 1 }
 0x38d   :  { %1399 = vsyncpa [#allocation9], 1 }
 0x38e   :  { %1400 = vsyncpa [#allocation12], 1 }
 0x38f   :  { %1401 = vsyncpa [#allocation4], 1 }
 0x390   :  { %1403 = vsyncpa [#allocation4 + $0x1], 1 }

</bundles_post_ra>
